<compile_context>
chip_gen: v7x
topology: tpu7x:2x2x1
jax: 0.10.0
libtpu: 0.0.40
codegen_flags: <defaults>
</compile_context>

<pallas_src>
import functools

import jax
import jax.numpy as jnp
from jax.experimental import pallas as pl
from jax.experimental.pallas import tpu as pltpu

LANE = 128
VMEM_LIMIT_BYTES = 32 * 1024 * 1024   # explicit scoped-VMEM budget (safe on v5e/v6e/v7x)


def _round_up(x, m):
    return (x + m - 1) // m * m


def _choose_node_tile(n):
    """Return (padded_N, dst_tile).

    The tile is a multiple of 8 sublanes and divides padded_N.  When the graph
    is small enough it is the whole (8-padded) node count, so every block is a
    full-array block and lane-divisibility constraints are trivially satisfied.
    When tiling is required the tile is a multiple of 128 (the pool matrix is
    tiled along this axis, so its last block dim must be lane-aligned) and is
    chosen as the largest option whose double-buffered adjacency tile still
    fits comfortably in the VMEM budget.
    """
    n8 = _round_up(max(n, 8), 8)
    if n8 <= 512:
        return n8, n8
    for tm in (512, 256, 128):
        np_pad = _round_up(n8, tm)
        adj_tile_bytes = 2 * tm * np_pad * 4          # double-buffered dst tile of A
        if adj_tile_bytes <= VMEM_LIMIT_BYTES // 2:
            return np_pad, tm
    return _round_up(n8, 128), 128


# ------------------------------ Pallas kernels ------------------------------ #
def gin_conv_kernel(adj_ref, x_ref, w1_ref, b1_ref, w2_ref, b2_ref, out_ref):
    """One GINConv layer for a tile of destination nodes.

    adj_ref : [TM, Np]   rows of (A + I) for this dst tile
    x_ref   : [Np, Fin]  all node features (resident across the grid)
    out_ref : [TM, Fh]   relu( relu(BN(agg @ W1 + b1)) @ W2 + b2 )  (BN folded)
    """
    agg = jnp.dot(adj_ref[...], x_ref[...], preferred_element_type=jnp.float32)
    h = jnp.dot(agg, w1_ref[...], preferred_element_type=jnp.float32) + b1_ref[...]
    h = jnp.maximum(h, 0.0)                         # MLP hidden ReLU (BN folded into W1/b1)
    h = jnp.dot(h, w2_ref[...], preferred_element_type=jnp.float32) + b2_ref[...]
    out_ref[...] = jnp.maximum(h, 0.0)              # outer .relu() from forward()


def gin_pool_head_kernel(adj_ref, x_ref, w1_ref, b1_ref, w2_ref, b2_ref,
                         pool_ref, wm1_ref, bm1_ref, wm2_ref, bm2_ref,
                         wl_ref, bl_ref, out_ref, pooled_acc):
    """Last GINConv layer fused with global_add_pool + head MLP + Linear + Sigmoid."""
    i = pl.program_id(0)

    @pl.when(i == 0)
    def _init():
        pooled_acc[...] = jnp.zeros_like(pooled_acc)

    # --- last GINConv layer on this dst tile (stays in VMEM, never hits HBM) ---
    agg = jnp.dot(adj_ref[...], x_ref[...], preferred_element_type=jnp.float32)
    h = jnp.dot(agg, w1_ref[...], preferred_element_type=jnp.float32) + b1_ref[...]
    h = jnp.maximum(h, 0.0)
    h = jnp.dot(h, w2_ref[...], preferred_element_type=jnp.float32) + b2_ref[...]
    h = jnp.maximum(h, 0.0)

    # --- global_add_pool contribution of this dst tile: [G, TM] @ [TM, Fh] ---
    pooled_acc[...] += jnp.dot(pool_ref[...], h, preferred_element_type=jnp.float32)

    # --- finalize: head MLP -> Linear -> Sigmoid on the pooled graph features ---
    @pl.when(i == pl.num_programs(0) - 1)
    def _finalize():
        g = pooled_acc[...]
        g = jnp.dot(g, wm1_ref[...], preferred_element_type=jnp.float32) + bm1_ref[...]
        g = jnp.maximum(g, 0.0)                     # dropout (p=0.5) = eval-mode identity
        g = jnp.dot(g, wm2_ref[...], preferred_element_type=jnp.float32) + bm2_ref[...]
        logit = jnp.dot(g, wl_ref[...], preferred_element_type=jnp.float32) + bl_ref[...]
        out_ref[...] = (1.0 / (1.0 + jnp.exp(-logit))).astype(out_ref.dtype)


# ------------------------------ pallas_call glue ---------------------------- #
def _gin_conv_call(adj_p, h_p, w1, b1, w2, b2, *, tm):
    np_ = adj_p.shape[0]
    fin = h_p.shape[1]
    fh = w1.shape[1]
    return pl.pallas_call(
        gin_conv_kernel,
        out_shape=jax.ShapeDtypeStruct((np_, fh), jnp.float32),
        grid_spec=pltpu.PrefetchScalarGridSpec(
            num_scalar_prefetch=0,
            grid=(np_ // tm,),
            in_specs=[
                pl.BlockSpec((tm, np_), lambda i: (i, 0)),     # adj dst tile
                pl.BlockSpec((np_, fin), lambda i: (0, 0)),    # all node features (resident)
                pl.BlockSpec((fin, fh), lambda i: (0, 0)),     # W1 (BN folded)
                pl.BlockSpec((1, fh), lambda i: (0, 0)),
                pl.BlockSpec((fh, fh), lambda i: (0, 0)),      # W2
                pl.BlockSpec((1, fh), lambda i: (0, 0)),
            ],
            out_specs=pl.BlockSpec((tm, fh), lambda i: (i, 0)),
        ),
        compiler_params=pltpu.CompilerParams(
            dimension_semantics=("parallel",),                 # dst tiles independent
            vmem_limit_bytes=VMEM_LIMIT_BYTES),
    )(adj_p, h_p, w1, b1, w2, b2)


def _gin_pool_head_call(adj_p, h_p, w1, b1, w2, b2, pool_p,
                        wm1, bm1, wm2, bm2, wl, bl, *, tm):
    np_ = adj_p.shape[0]
    fin = h_p.shape[1]
    fh = w1.shape[1]
    fo = wm2.shape[1]
    co = wl.shape[1]
    gp = pool_p.shape[0]
    return pl.pallas_call(
        gin_pool_head_kernel,
        out_shape=jax.ShapeDtypeStruct((gp, co), jnp.float32),
        grid_spec=pltpu.PrefetchScalarGridSpec(
            num_scalar_prefetch=0,
            grid=(np_ // tm,),
            in_specs=[
                pl.BlockSpec((tm, np_), lambda i: (i, 0)),     # adj dst tile
                pl.BlockSpec((np_, fin), lambda i: (0, 0)),    # all node features (resident)
                pl.BlockSpec((fin, fh), lambda i: (0, 0)),     # conv W1 (BN folded)
                pl.BlockSpec((1, fh), lambda i: (0, 0)),
                pl.BlockSpec((fh, fh), lambda i: (0, 0)),      # conv W2
                pl.BlockSpec((1, fh), lambda i: (0, 0)),
                pl.BlockSpec((gp, tm), lambda i: (0, i)),      # pooling matrix tile
                pl.BlockSpec((fh, fh), lambda i: (0, 0)),      # head MLP W1
                pl.BlockSpec((1, fh), lambda i: (0, 0)),
                pl.BlockSpec((fh, fo), lambda i: (0, 0)),      # head MLP W2
                pl.BlockSpec((1, fo), lambda i: (0, 0)),
                pl.BlockSpec((fo, co), lambda i: (0, 0)),      # final Linear
                pl.BlockSpec((1, co), lambda i: (0, 0)),
            ],
            out_specs=pl.BlockSpec((gp, co), lambda i: (0, 0)),
            scratch_shapes=[pltpu.VMEM((gp, fh), jnp.float32)],
        ),
        compiler_params=pltpu.CompilerParams(
            # pooled accumulator carried across dst tiles -> reduction axis
            dimension_semantics=("arbitrary",),
            vmem_limit_bytes=VMEM_LIMIT_BYTES),
    )(adj_p, h_p, w1, b1, w2, b2, pool_p, wm1, bm1, wm2, bm2, wl, bl)


# --------------------------------- wrapper ---------------------------------- #
def dense_adjacency_plus_self(edge_index, num_nodes):
    """A[dst, src] = edge multiplicity (GIN sum aggregation), + I for (1+eps)*x_i, eps=0."""
    src, dst = edge_index[0], edge_index[1]
    adj = jnp.zeros((num_nodes, num_nodes), jnp.float32)
    adj = adj.at[dst, src].add(1.0)
    return adj + jnp.eye(num_nodes, dtype=jnp.float32)


def pool_matrix(batch, num_graphs, num_nodes):
    """P[g, n] = 1 if node n belongs to graph g (global_add_pool as a matmul)."""
    del num_nodes
    return (batch[None, :] == jnp.arange(num_graphs, dtype=batch.dtype)[:, None]
            ).astype(jnp.float32)


def _pad2(a, rows, cols):
    a = jnp.asarray(a, jnp.float32)
    return jnp.pad(a, ((0, rows - a.shape[0]), (0, cols - a.shape[1])))


def _pad_bias(b, cols):
    b = jnp.asarray(b, jnp.float32).reshape(1, -1)
    return jnp.pad(b, ((0, 0), (0, cols - b.shape[1])))


def _fold_bn(w1, b1, gamma, beta, mean, var, eps=1e-5):
    """Fold eval-mode BatchNorm1d (after Linear1 of the GIN MLP) into Linear1."""
    s = gamma / jnp.sqrt(var + eps)
    return w1 * s[None, :], (b1 - mean) * s + beta


@functools.partial(jax.jit, static_argnums=(3,))
def discriminator_forward(x, edge_index, batch, num_graphs, params):
    """Eval-mode forward of the Discriminator (GINConv stack + pool + head)."""
    n, f_in = x.shape
    hid = params["convs"][0]["w2"].shape[1]
    out_ch = params["head"]["wm2"].shape[1]

    np_, tm = _choose_node_tile(n)
    gp = _round_up(max(num_graphs, 8), 8)
    fh = _round_up(hid, LANE)
    fo = _round_up(out_ch, LANE)
    co = LANE                                   # final 1-wide output, lane-padded

    # TODO(synk): for very large graphs the adjacency should be stored bf16/int8
    #             and the source dimension tiled too (online aggregation).
    adj_p = _pad2(dense_adjacency_plus_self(edge_index, n), np_, np_)
    pool_p = _pad2(pool_matrix(batch, num_graphs, n), gp, np_)

    h_p = _pad2(x, np_, _round_up(f_in, LANE))
    out_p = None
    num_layers = len(params["convs"])
    for l, lp in enumerate(params["convs"]):
        fin_p = h_p.shape[1]
        w1f, b1f = _fold_bn(lp["w1"], lp["b1"], lp["bn_gamma"], lp["bn_beta"],
                            lp["bn_mean"], lp["bn_var"])
        w1p, b1p = _pad2(w1f, fin_p, fh), _pad_bias(b1f, fh)
        w2p, b2p = _pad2(lp["w2"], fh, fh), _pad_bias(lp["b2"], fh)
        if l < num_layers - 1:
            h_p = _gin_conv_call(adj_p, h_p, w1p, b1p, w2p, b2p, tm=tm)
        else:
            hp = params["head"]
            out_p = _gin_pool_head_call(
                adj_p, h_p, w1p, b1p, w2p, b2p, pool_p,
                _pad2(hp["wm1"], fh, fh), _pad_bias(hp["bm1"], fh),
                _pad2(hp["wm2"], fh, fo), _pad_bias(hp["bm2"], fo),
                _pad2(hp["wl"], fo, co), _pad_bias(hp["bl"], co),
                tm=tm)
    return out_p[:num_graphs, :1]


# ----------------------------- pure-JAX reference --------------------------- #
def discriminator_ref(x, edge_index, batch, num_graphs, params, bn_eps=1e-5):
    n = x.shape[0]
    adj = dense_adjacency_plus_self(edge_index, n)
    h = x.astype(jnp.float32)
    for lp in params["convs"]:
        agg = adj @ h
        z = agg @ lp["w1"] + lp["b1"]
        z = (z - lp["bn_mean"]) / jnp.sqrt(lp["bn_var"] + bn_eps) * lp["bn_gamma"] + lp["bn_beta"]
        z = jnp.maximum(z, 0.0)
        z = z @ lp["w2"] + lp["b2"]
        h = jnp.maximum(z, 0.0)
    pooled = pool_matrix(batch, num_graphs, n) @ h
    hp = params["head"]
    g = jnp.maximum(pooled @ hp["wm1"] + hp["bm1"], 0.0)
    g = g @ hp["wm2"] + hp["bm2"]
    logit = g @ hp["wl"] + hp["bl"]
    return 1.0 / (1.0 + jnp.exp(-logit))


# ----------------------------------- main ------------------------------------ #
if __name__ == "__main__":
    IN_CH, HID, OUT_CH = 7, 32, 16
    NUM_LAYERS = 2
    GRAPHS, NODES_PER_GRAPH, EDGES_PER_GRAPH = 3, 8, 20
    N = GRAPHS * NODES_PER_GRAPH                          # 24 nodes total

    keys = iter(jax.random.split(jax.random.PRNGKey(0), 32))

    def nrm(shape, scale=0.2):
        return scale * jax.random.normal(next(keys), shape, jnp.float32)

    # deterministic inputs
    x = jax.random.normal(next(keys), (N, IN_CH), jnp.float32)
    batch = jnp.repeat(jnp.arange(GRAPHS, dtype=jnp.int32), NODES_PER_GRAPH)
    srcs, dsts = [], []
    for g in range(GRAPHS):                               # edges stay within each graph
        lo, hi = g * NODES_PER_GRAPH, (g + 1) * NODES_PER_GRAPH
        srcs.append(jax.random.randint(next(keys), (EDGES_PER_GRAPH,), lo, hi))
        dsts.append(jax.random.randint(next(keys), (EDGES_PER_GRAPH,), lo, hi))
    edge_index = jnp.stack([jnp.concatenate(srcs), jnp.concatenate(dsts)]).astype(jnp.int32)

    # deterministic parameters
    convs = []
    fin = IN_CH
    for _ in range(NUM_LAYERS):
        convs.append({
            "w1": nrm((fin, HID)), "b1": nrm((HID,), 0.1),
            "bn_gamma": 1.0 + nrm((HID,), 0.1), "bn_beta": nrm((HID,), 0.1),
            "bn_mean": nrm((HID,), 0.1), "bn_var": 1.0 + jnp.abs(nrm((HID,), 0.2)),
            "w2": nrm((HID, HID)), "b2": nrm((HID,), 0.1),
        })
        fin = HID
    params = {
        "convs": convs,
        "head": {
            "wm1": nrm((HID, HID)), "bm1": nrm((HID,), 0.1),
            "wm2": nrm((HID, OUT_CH)), "bm2": nrm((OUT_CH,), 0.1),
            "wl": nrm((OUT_CH, 1)), "bl": nrm((1,), 0.1),
        },
    }

    out = discriminator_forward(x, edge_index, batch, GRAPHS, params)
    out = jax.block_until_ready(out)

    assert out.shape == (GRAPHS, 1)
    assert bool(jnp.all((out > 0.0) & (out < 1.0)))        # sigmoid range
    ref = discriminator_ref(x, edge_index, batch, GRAPHS, params)
    assert bool(jnp.all(jnp.abs(out - ref) < 1e-4)), (out, ref)
    print("KERNEL_OK")
</pallas_src>

<mosaic_0001>
module attributes {stable_mosaic.version = 11 : i64} {
  func.func @gin_conv_kernel(%arg0: i32, %arg1: memref<24x24xf32, #tpu.memory_space<vmem>>, %arg2: memref<24x128xf32, #tpu.memory_space<vmem>>, %arg3: memref<128x128xf32, #tpu.memory_space<vmem>>, %arg4: memref<1x128xf32, #tpu.memory_space<vmem>>, %arg5: memref<128x128xf32, #tpu.memory_space<vmem>>, %arg6: memref<1x128xf32, #tpu.memory_space<vmem>>, %arg7: memref<24x128xf32, #tpu.memory_space<vmem>>) attributes {dimension_semantics = [#tpu.dimension_semantics<parallel>], iteration_bounds = array<i64: 1>, scalar_prefetch = 0 : i64, scratch_operands = 0 : i64, tpu.core_type = #tpu.core_type<tc>, window_params = [{transform_indices = @transform_0, window_bounds = array<i64: 24, 24>}, {pipeline_mode = #tpu.pipeline_mode<synchronous>, transform_indices = @transform_1, window_bounds = array<i64: 24, 128>}, {pipeline_mode = #tpu.pipeline_mode<synchronous>, transform_indices = @transform_2, window_bounds = array<i64: 128, 128>}, {pipeline_mode = #tpu.pipeline_mode<synchronous>, transform_indices = @transform_3, window_bounds = array<i64: 1, 128>}, {pipeline_mode = #tpu.pipeline_mode<synchronous>, transform_indices = @transform_4, window_bounds = array<i64: 128, 128>}, {pipeline_mode = #tpu.pipeline_mode<synchronous>, transform_indices = @transform_5, window_bounds = array<i64: 1, 128>}, {transform_indices = @transform_6, window_bounds = array<i64: 24, 128>}]} {
    %c0 = arith.constant 0 : index
    %c0_0 = arith.constant 0 : index
    %0 = vector.load %arg1[%c0, %c0_0] : memref<24x24xf32, #tpu.memory_space<vmem>>, vector<24x24xf32>
    %c0_1 = arith.constant 0 : index
    %c0_2 = arith.constant 0 : index
    %1 = vector.load %arg2[%c0_1, %c0_2] : memref<24x128xf32, #tpu.memory_space<vmem>>, vector<24x128xf32>
    %cst = arith.constant dense<0.000000e+00> : vector<24x128xf32>
    %2 = tpu.matmul %0, %1, %cst {dimension_numbers = #tpu.dot_dimension_numbers<[1], [0], [0], [1], [0, 0, 1, 1], [], []>} : vector<24x24xf32>, vector<24x128xf32>, vector<24x128xf32> -> vector<24x128xf32>
    %c0_3 = arith.constant 0 : index
    %c0_4 = arith.constant 0 : index
    %3 = vector.load %arg3[%c0_3, %c0_4] : memref<128x128xf32, #tpu.memory_space<vmem>>, vector<128x128xf32>
    %cst_5 = arith.constant dense<0.000000e+00> : vector<24x128xf32>
    %4 = tpu.matmul %2, %3, %cst_5 {dimension_numbers = #tpu.dot_dimension_numbers<[1], [0], [0], [1], [0, 0, 1, 1], [], []>} : vector<24x128xf32>, vector<128x128xf32>, vector<24x128xf32> -> vector<24x128xf32>
    %c0_6 = arith.constant 0 : index
    %c0_7 = arith.constant 0 : index
    %5 = vector.load %arg4[%c0_6, %c0_7] : memref<1x128xf32, #tpu.memory_space<vmem>>, vector<1x128xf32>
    %6 = vector.broadcast %5 : vector<1x128xf32> to vector<24x128xf32>
    %7 = arith.addf %4, %6 : vector<24x128xf32>
    %cst_8 = arith.constant 0.000000e+00 : f32
    %8 = vector.broadcast %cst_8 : f32 to vector<24x128xf32>
    %9 = arith.maximumf %7, %8 : vector<24x128xf32>
    %c0_9 = arith.constant 0 : index
    %c0_10 = arith.constant 0 : index
    %10 = vector.load %arg5[%c0_9, %c0_10] : memref<128x128xf32, #tpu.memory_space<vmem>>, vector<128x128xf32>
    %cst_11 = arith.constant dense<0.000000e+00> : vector<24x128xf32>
    %11 = tpu.matmul %9, %10, %cst_11 {dimension_numbers = #tpu.dot_dimension_numbers<[1], [0], [0], [1], [0, 0, 1, 1], [], []>} : vector<24x128xf32>, vector<128x128xf32>, vector<24x128xf32> -> vector<24x128xf32>
    %c0_12 = arith.constant 0 : index
    %c0_13 = arith.constant 0 : index
    %12 = vector.load %arg6[%c0_12, %c0_13] : memref<1x128xf32, #tpu.memory_space<vmem>>, vector<1x128xf32>
    %13 = vector.broadcast %12 : vector<1x128xf32> to vector<24x128xf32>
    %14 = arith.addf %11, %13 : vector<24x128xf32>
    %cst_14 = arith.constant 0.000000e+00 : f32
    %15 = vector.broadcast %cst_14 : f32 to vector<24x128xf32>
    %16 = arith.maximumf %14, %15 : vector<24x128xf32>
    %c0_15 = arith.constant 0 : index
    %c0_16 = arith.constant 0 : index
    %17 = vector.load %arg7[%c0_15, %c0_16] : memref<24x128xf32, #tpu.memory_space<vmem>>, vector<24x128xf32>
    tpu.vector_store %arg7[%c0_15, %c0_16], %16 {strides = array<i32>} : memref<24x128xf32, #tpu.memory_space<vmem>>, vector<24x128xf32>,
    return
  }
  func.func @transform_0(%arg0: i32) -> (i32, i32) {
    %c0_i32 = arith.constant 0 : i32
    %c0_i32_0 = arith.constant 0 : i32
    return %arg0, %c0_i32 : i32, i32
  }
  func.func @transform_1(%arg0: i32) -> (i32, i32) {
    %c0_i32 = arith.constant 0 : i32
    %c0_i32_0 = arith.constant 0 : i32
    %c0_i32_1 = arith.constant 0 : i32
    return %c0_i32, %c0_i32_0 : i32, i32
  }
  func.func @transform_2(%arg0: i32) -> (i32, i32) {
    %c0_i32 = arith.constant 0 : i32
    %c0_i32_0 = arith.constant 0 : i32
    %c0_i32_1 = arith.constant 0 : i32
    return %c0_i32, %c0_i32_0 : i32, i32
  }
  func.func @transform_3(%arg0: i32) -> (i32, i32) {
    %c0_i32 = arith.constant 0 : i32
    %c0_i32_0 = arith.constant 0 : i32
    %c0_i32_1 = arith.constant 0 : i32
    return %c0_i32, %c0_i32_0 : i32, i32
  }
  func.func @transform_4(%arg0: i32) -> (i32, i32) {
    %c0_i32 = arith.constant 0 : i32
    %c0_i32_0 = arith.constant 0 : i32
    %c0_i32_1 = arith.constant 0 : i32
    return %c0_i32, %c0_i32_0 : i32, i32
  }
  func.func @transform_5(%arg0: i32) -> (i32, i32) {
    %c0_i32 = arith.constant 0 : i32
    %c0_i32_0 = arith.constant 0 : i32
    %c0_i32_1 = arith.constant 0 : i32
    return %c0_i32, %c0_i32_0 : i32, i32
  }
  func.func @transform_6(%arg0: i32) -> (i32, i32) {
    %c0_i32 = arith.constant 0 : i32
    %c0_i32_0 = arith.constant 0 : i32
    return %arg0, %c0_i32 : i32, i32
  }
}

module attributes {stable_mosaic.version = 11 : i64} {
  func.func @gin_pool_head_kernel(%arg0: i32, %arg1: memref<24x24xf32, #tpu.memory_space<vmem>>, %arg2: memref<24x128xf32, #tpu.memory_space<vmem>>, %arg3: memref<128x128xf32, #tpu.memory_space<vmem>>, %arg4: memref<1x128xf32, #tpu.memory_space<vmem>>, %arg5: memref<128x128xf32, #tpu.memory_space<vmem>>, %arg6: memref<1x128xf32, #tpu.memory_space<vmem>>, %arg7: memref<8x24xf32, #tpu.memory_space<vmem>>, %arg8: memref<128x128xf32, #tpu.memory_space<vmem>>, %arg9: memref<1x128xf32, #tpu.memory_space<vmem>>, %arg10: memref<128x128xf32, #tpu.memory_space<vmem>>, %arg11: memref<1x128xf32, #tpu.memory_space<vmem>>, %arg12: memref<128x128xf32, #tpu.memory_space<vmem>>, %arg13: memref<1x128xf32, #tpu.memory_space<vmem>>, %arg14: memref<8x128xf32, #tpu.memory_space<vmem>>, %arg15: memref<8x128xf32, #tpu.memory_space<vmem>>) attributes {dimension_semantics = [#tpu.dimension_semantics<arbitrary>], iteration_bounds = array<i64: 1>, scalar_prefetch = 0 : i64, scratch_operands = 1 : i64, tpu.core_type = #tpu.core_type<tc>, window_params = [{transform_indices = @transform_0, window_bounds = array<i64: 24, 24>}, {pipeline_mode = #tpu.pipeline_mode<synchronous>, transform_indices = @transform_1, window_bounds = array<i64: 24, 128>}, {pipeline_mode = #tpu.pipeline_mode<synchronous>, transform_indices = @transform_2, window_bounds = array<i64: 128, 128>}, {pipeline_mode = #tpu.pipeline_mode<synchronous>, transform_indices = @transform_3, window_bounds = array<i64: 1, 128>}, {pipeline_mode = #tpu.pipeline_mode<synchronous>, transform_indices = @transform_4, window_bounds = array<i64: 128, 128>}, {pipeline_mode = #tpu.pipeline_mode<synchronous>, transform_indices = @transform_5, window_bounds = array<i64: 1, 128>}, {transform_indices = @transform_6, window_bounds = array<i64: 8, 24>}, {pipeline_mode = #tpu.pipeline_mode<synchronous>, transform_indices = @transform_7, window_bounds = array<i64: 128, 128>}, {pipeline_mode = #tpu.pipeline_mode<synchronous>, transform_indices = @transform_8, window_bounds = array<i64: 1, 128>}, {pipeline_mode = #tpu.pipeline_mode<synchronous>, transform_indices = @transform_9, window_bounds = array<i64: 128, 128>}, {pipeline_mode = #tpu.pipeline_mode<synchronous>, transform_indices = @transform_10, window_bounds = array<i64: 1, 128>}, {pipeline_mode = #tpu.pipeline_mode<synchronous>, transform_indices = @transform_11, window_bounds = array<i64: 128, 128>}, {pipeline_mode = #tpu.pipeline_mode<synchronous>, transform_indices = @transform_12, window_bounds = array<i64: 1, 128>}, {pipeline_mode = #tpu.pipeline_mode<synchronous>, transform_indices = @transform_13, window_bounds = array<i64: 8, 128>}]} {
    %c0_i32 = arith.constant 0 : i32
    %0 = arith.cmpi eq, %arg0, %c0_i32 : i32
    %1 = arith.extui %0 : i1 to i32
    %c0_i32_0 = arith.constant 0 : i32
    %2 = arith.cmpi ne, %1, %c0_i32_0 : i32
    scf.if %2 {
      %cst_25 = arith.constant 0.000000e+00 : f32
      %28 = vector.broadcast %cst_25 : f32 to vector<8x128xf32>
      %c0_26 = arith.constant 0 : index
      %c0_27 = arith.constant 0 : index
      %29 = vector.load %arg15[%c0_26, %c0_27] : memref<8x128xf32, #tpu.memory_space<vmem>>, vector<8x128xf32>
      tpu.vector_store %arg15[%c0_26, %c0_27], %28 {strides = array<i32>} : memref<8x128xf32, #tpu.memory_space<vmem>>, vector<8x128xf32>,
    } else {
    }
    %c0 = arith.constant 0 : index
    %c0_1 = arith.constant 0 : index
    %3 = vector.load %arg1[%c0, %c0_1] : memref<24x24xf32, #tpu.memory_space<vmem>>, vector<24x24xf32>
    %c0_2 = arith.constant 0 : index
    %c0_3 = arith.constant 0 : index
    %4 = vector.load %arg2[%c0_2, %c0_3] : memref<24x128xf32, #tpu.memory_space<vmem>>, vector<24x128xf32>
    %cst = arith.constant dense<0.000000e+00> : vector<24x128xf32>
    %5 = tpu.matmul %3, %4, %cst {dimension_numbers = #tpu.dot_dimension_numbers<[1], [0], [0], [1], [0, 0, 1, 1], [], []>} : vector<24x24xf32>, vector<24x128xf32>, vector<24x128xf32> -> vector<24x128xf32>
    %c0_4 = arith.constant 0 : index
    %c0_5 = arith.constant 0 : index
    %6 = vector.load %arg3[%c0_4, %c0_5] : memref<128x128xf32, #tpu.memory_space<vmem>>, vector<128x128xf32>
    %cst_6 = arith.constant dense<0.000000e+00> : vector<24x128xf32>
    %7 = tpu.matmul %5, %6, %cst_6 {dimension_numbers = #tpu.dot_dimension_numbers<[1], [0], [0], [1], [0, 0, 1, 1], [], []>} : vector<24x128xf32>, vector<128x128xf32>, vector<24x128xf32> -> vector<24x128xf32>
    %c0_7 = arith.constant 0 : index
    %c0_8 = arith.constant 0 : index
    %8 = vector.load %arg4[%c0_7, %c0_8] : memref<1x128xf32, #tpu.memory_space<vmem>>, vector<1x128xf32>
    %9 = vector.broadcast %8 : vector<1x128xf32> to vector<24x128xf32>
    %10 = arith.addf %7, %9 : vector<24x128xf32>
    %cst_9 = arith.constant 0.000000e+00 : f32
    %11 = vector.broadcast %cst_9 : f32 to vector<24x128xf32>
    %12 = arith.maximumf %10, %11 : vector<24x128xf32>
    %c0_10 = arith.constant 0 : index
    %c0_11 = arith.constant 0 : index
    %13 = vector.load %arg5[%c0_10, %c0_11] : memref<128x128xf32, #tpu.memory_space<vmem>>, vector<128x128xf32>
    %cst_12 = arith.constant dense<0.000000e+00> : vector<24x128xf32>
    %14 = tpu.matmul %12, %13, %cst_12 {dimension_numbers = #tpu.dot_dimension_numbers<[1], [0], [0], [1], [0, 0, 1, 1], [], []>} : vector<24x128xf32>, vector<128x128xf32>, vector<24x128xf32> -> vector<24x128xf32>
    %c0_13 = arith.constant 0 : index
    %c0_14 = arith.constant 0 : index
    %15 = vector.load %arg6[%c0_13, %c0_14] : memref<1x128xf32, #tpu.memory_space<vmem>>, vector<1x128xf32>
    %16 = vector.broadcast %15 : vector<1x128xf32> to vector<24x128xf32>
    %17 = arith.addf %14, %16 : vector<24x128xf32>
    %cst_15 = arith.constant 0.000000e+00 : f32
    %18 = vector.broadcast %cst_15 : f32 to vector<24x128xf32>
    %19 = arith.maximumf %17, %18 : vector<24x128xf32>
    %c0_16 = arith.constant 0 : index
    %c0_17 = arith.constant 0 : index
    %20 = vector.load %arg15[%c0_16, %c0_17] : memref<8x128xf32, #tpu.memory_space<vmem>>, vector<8x128xf32>
    %c0_18 = arith.constant 0 : index
    %c0_19 = arith.constant 0 : index
    %21 = vector.load %arg7[%c0_18, %c0_19] : memref<8x24xf32, #tpu.memory_space<vmem>>, vector<8x24xf32>
    %cst_20 = arith.constant dense<0.000000e+00> : vector<8x128xf32>
    %22 = tpu.matmul %21, %19, %cst_20 {dimension_numbers = #tpu.dot_dimension_numbers<[1], [0], [0], [1], [0, 0, 1, 1], [], []>} : vector<8x24xf32>, vector<24x128xf32>, vector<8x128xf32> -> vector<8x128xf32>
    %23 = arith.addf %20, %22 : vector<8x128xf32>
    %c0_21 = arith.constant 0 : index
    %c0_22 = arith.constant 0 : index
    %24 = vector.load %arg15[%c0_21, %c0_22] : memref<8x128xf32, #tpu.memory_space<vmem>>, vector<8x128xf32>
    tpu.vector_store %arg15[%c0_21, %c0_22], %23 {strides = array<i32>} : memref<8x128xf32, #tpu.memory_space<vmem>>, vector<8x128xf32>,
    %c0_i32_23 = arith.constant 0 : i32
    %25 = arith.cmpi eq, %arg0, %c0_i32_23 : i32
    %26 = arith.extui %25 : i1 to i32
    %c0_i32_24 = arith.constant 0 : i32
    %27 = arith.cmpi ne, %26, %c0_i32_24 : i32
    scf.if %27 {
      %c0_25 = arith.constant 0 : index
      %c0_26 = arith.constant 0 : index
      %28 = vector.load %arg15[%c0_25, %c0_26] : memref<8x128xf32, #tpu.memory_space<vmem>>, vector<8x128xf32>
      %c0_27 = arith.constant 0 : index
      %c0_28 = arith.constant 0 : index
      %29 = vector.load %arg8[%c0_27, %c0_28] : memref<128x128xf32, #tpu.memory_space<vmem>>, vector<128x128xf32>
      %cst_29 = arith.constant dense<0.000000e+00> : vector<8x128xf32>
      %30 = tpu.matmul %28, %29, %cst_29 {dimension_numbers = #tpu.dot_dimension_numbers<[1], [0], [0], [1], [0, 0, 1, 1], [], []>} : vector<8x128xf32>, vector<128x128xf32>, vector<8x128xf32> -> vector<8x128xf32>
      %c0_30 = arith.constant 0 : index
      %c0_31 = arith.constant 0 : index
      %31 = vector.load %arg9[%c0_30, %c0_31] : memref<1x128xf32, #tpu.memory_space<vmem>>, vector<1x128xf32>
      %32 = vector.broadcast %31 : vector<1x128xf32> to vector<8x128xf32>
      %33 = arith.addf %30, %32 : vector<8x128xf32>
      %cst_32 = arith.constant 0.000000e+00 : f32
      %34 = vector.broadcast %cst_32 : f32 to vector<8x128xf32>
      %35 = arith.maximumf %33, %34 : vector<8x128xf32>
      %c0_33 = arith.constant 0 : index
      %c0_34 = arith.constant 0 : index
      %36 = vector.load %arg10[%c0_33, %c0_34] : memref<128x128xf32, #tpu.memory_space<vmem>>, vector<128x128xf32>
      %cst_35 = arith.constant dense<0.000000e+00> : vector<8x128xf32>
      %37 = tpu.matmul %35, %36, %cst_35 {dimension_numbers = #tpu.dot_dimension_numbers<[1], [0], [0], [1], [0, 0, 1, 1], [], []>} : vector<8x128xf32>, vector<128x128xf32>, vector<8x128xf32> -> vector<8x128xf32>
      %c0_36 = arith.constant 0 : index
      %c0_37 = arith.constant 0 : index
      %38 = vector.load %arg11[%c0_36, %c0_37] : memref<1x128xf32, #tpu.memory_space<vmem>>, vector<1x128xf32>
      %39 = vector.broadcast %38 : vector<1x128xf32> to vector<8x128xf32>
      %40 = arith.addf %37, %39 : vector<8x128xf32>
      %c0_38 = arith.constant 0 : index
      %c0_39 = arith.constant 0 : index
      %41 = vector.load %arg12[%c0_38, %c0_39] : memref<128x128xf32, #tpu.memory_space<vmem>>, vector<128x128xf32>
      %cst_40 = arith.constant dense<0.000000e+00> : vector<8x128xf32>
      %42 = tpu.matmul %40, %41, %cst_40 {dimension_numbers = #tpu.dot_dimension_numbers<[1], [0], [0], [1], [0, 0, 1, 1], [], []>} : vector<8x128xf32>, vector<128x128xf32>, vector<8x128xf32> -> vector<8x128xf32>
      %c0_41 = arith.constant 0 : index
      %c0_42 = arith.constant 0 : index
      %43 = vector.load %arg13[%c0_41, %c0_42] : memref<1x128xf32, #tpu.memory_space<vmem>>, vector<1x128xf32>
      %44 = vector.broadcast %43 : vector<1x128xf32> to vector<8x128xf32>
      %45 = arith.addf %42, %44 : vector<8x128xf32>
      %cst_43 = arith.constant 0.000000e+00 : f32
      %46 = vector.broadcast %cst_43 : f32 to vector<8x128xf32>
      %47 = arith.subf %46, %45 : vector<8x128xf32>
      %48 = math.exp %47 : vector<8x128xf32>
      %cst_44 = arith.constant 1.000000e+00 : f32
      %49 = vector.broadcast %cst_44 : f32 to vector<8x128xf32>
      %50 = arith.addf %49, %48 : vector<8x128xf32>
      %cst_45 = arith.constant 1.000000e+00 : f32
      %51 = vector.broadcast %cst_45 : f32 to vector<8x128xf32>
      %52 = arith.divf %51, %50 : vector<8x128xf32>
      %c0_46 = arith.constant 0 : index
      %c0_47 = arith.constant 0 : index
      %53 = vector.load %arg14[%c0_46, %c0_47] : memref<8x128xf32, #tpu.memory_space<vmem>>, vector<8x128xf32>
      tpu.vector_store %arg14[%c0_46, %c0_47], %52 {strides = array<i32>} : memref<8x128xf32, #tpu.memory_space<vmem>>, vector<8x128xf32>,
    } else {
    }
    return
  }
  func.func @transform_0(%arg0: i32) -> (i32, i32) {
    %c0_i32 = arith.constant 0 : i32
    %c0_i32_0 = arith.constant 0 : i32
    return %arg0, %c0_i32 : i32, i32
  }
  func.func @transform_1(%arg0: i32) -> (i32, i32) {
    %c0_i32 = arith.constant 0 : i32
    %c0_i32_0 = arith.constant 0 : i32
    %c0_i32_1 = arith.constant 0 : i32
    return %c0_i32, %c0_i32_0 : i32, i32
  }
  func.func @transform_2(%arg0: i32) -> (i32, i32) {
    %c0_i32 = arith.constant 0 : i32
    %c0_i32_0 = arith.constant 0 : i32
    %c0_i32_1 = arith.constant 0 : i32
    return %c0_i32, %c0_i32_0 : i32, i32
  }
  func.func @transform_3(%arg0: i32) -> (i32, i32) {
    %c0_i32 = arith.constant 0 : i32
    %c0_i32_0 = arith.constant 0 : i32
    %c0_i32_1 = arith.constant 0 : i32
    return %c0_i32, %c0_i32_0 : i32, i32
  }
  func.func @transform_4(%arg0: i32) -> (i32, i32) {
    %c0_i32 = arith.constant 0 : i32
    %c0_i32_0 = arith.constant 0 : i32
    %c0_i32_1 = arith.constant 0 : i32
    return %c0_i32, %c0_i32_0 : i32, i32
  }
  func.func @transform_5(%arg0: i32) -> (i32, i32) {
    %c0_i32 = arith.constant 0 : i32
    %c0_i32_0 = arith.constant 0 : i32
    %c0_i32_1 = arith.constant 0 : i32
    return %c0_i32, %c0_i32_0 : i32, i32
  }
  func.func @transform_6(%arg0: i32) -> (i32, i32) {
    %c0_i32 = arith.constant 0 : i32
    %c0_i32_0 = arith.constant 0 : i32
    return %c0_i32, %arg0 : i32, i32
  }
  func.func @transform_7(%arg0: i32) -> (i32, i32) {
    %c0_i32 = arith.constant 0 : i32
    %c0_i32_0 = arith.constant 0 : i32
    %c0_i32_1 = arith.constant 0 : i32
    return %c0_i32, %c0_i32_0 : i32, i32
  }
  func.func @transform_8(%arg0: i32) -> (i32, i32) {
    %c0_i32 = arith.constant 0 : i32
    %c0_i32_0 = arith.constant 0 : i32
    %c0_i32_1 = arith.constant 0 : i32
    return %c0_i32, %c0_i32_0 : i32, i32
  }
  func.func @transform_9(%arg0: i32) -> (i32, i32) {
    %c0_i32 = arith.constant 0 : i32
    %c0_i32_0 = arith.constant 0 : i32
    %c0_i32_1 = arith.constant 0 : i32
    return %c0_i32, %c0_i32_0 : i32, i32
  }
  func.func @transform_10(%arg0: i32) -> (i32, i32) {
    %c0_i32 = arith.constant 0 : i32
    %c0_i32_0 = arith.constant 0 : i32
    %c0_i32_1 = arith.constant 0 : i32
    return %c0_i32, %c0_i32_0 : i32, i32
  }
  func.func @transform_11(%arg0: i32) -> (i32, i32) {
    %c0_i32 = arith.constant 0 : i32
    %c0_i32_0 = arith.constant 0 : i32
    %c0_i32_1 = arith.constant 0 : i32
    return %c0_i32, %c0_i32_0 : i32, i32
  }
  func.func @transform_12(%arg0: i32) -> (i32, i32) {
    %c0_i32 = arith.constant 0 : i32
    %c0_i32_0 = arith.constant 0 : i32
    %c0_i32_1 = arith.constant 0 : i32
    return %c0_i32, %c0_i32_0 : i32, i32
  }
  func.func @transform_13(%arg0: i32) -> (i32, i32) {
    %c0_i32 = arith.constant 0 : i32
    %c0_i32_0 = arith.constant 0 : i32
    %c0_i32_1 = arith.constant 0 : i32
    return %c0_i32, %c0_i32_0 : i32, i32
  }
}

</mosaic_0001>

<bundles_post_ra>
// kernel: discriminator_forward.2
= control target key start
LH: loop header
LB: loop body
LE: loop exit
PB: predicated region body
PF: predicated region fallthrough
CT: control target
= control target key end

     0   :  { %v538_v0 = vmov 0.0|0.0   ;;  %vm539_vm0 = vmmov 0   ;;  %v540_v3 = vmov 0.0   ;;  %vm29_vm1 = vcmask 195584   ;;  %s744_s1 = inlined_call_operand.vmem [shape: f32[24,128], index: 1, kind: input, shape index: {}]   ;;  %s745_s2 = inlined_call_operand.vmem [shape: f32[128,128], index: 2, kind: input, shape index: {}]   ;;  %s746_s0 = inlined_call_operand.vmem [shape: f32[24,24], index: 0, kind: input, shape index: {}]   ;;  %s747_s4 = inlined_call_operand.vmem [shape: f32[128,128], index: 4, kind: input, shape index: {}]   ;;  %s748_s3 = inlined_call_operand.vmem [shape: f32[1,128], index: 3, kind: input, shape index: {}]   ;;  %s749_s5 = inlined_call_operand.vmem [shape: f32[1,128], index: 5, kind: input, shape index: {}]   ;;  %s750_s6 = inlined_call_operand.vmem [shape: f32[24,128], index: 6, kind: output, shape index: {}]  }
   0x1   :  { %484 = vmatprep.subr.bf16.mxu0 %v538_v0  ;;  %v26_v1 = vld [vmem:[%s744_s1] sm:$0xff]  ;;  %v27_v2 = vld [vmem:[%s744_s1 + $0x8] sm:$0xff]  ;;  %393 = vmatprep.mubr.msk.f32.mxu0 %vm539_vm0, %v540_v3  ;;  %v121_v7 = vld [vmem:[%s745_s2 + $0x10] sm:$0xff] }
   0x2   :  { %v485_v4 = vpack.c.bf16 %v27_v2, %v26_v1  ;;  %487 = vmatprep.subr.bf16.mxu1 %v538_v0  ;;  %434 = vmatprep.mubr.msk.f32.mxu1 %vm539_vm0, %v540_v3  ;;  %v119_v5 = vld [vmem:[%s745_s2] sm:$0xff]  ;;  %v120_v6 = vld [vmem:[%s745_s2 + $0x8] sm:$0xff]  ;;  %v122_v9 = vld [vmem:[%s745_s2 + $0x18] sm:$0xff] }
   0x3   :  { %v488_v8 = vpack.c.bf16 %v120_v6, %v119_v5  ;;  %v28_v10 = vld [vmem:[%s744_s1 + $0x10] sm:$0xff]  ;;  %v23_v11 = vld [vmem:[%s746_s0] sm:$0xff]  ;;  %v491_v12 = vpack.c.bf16 %v122_v9, %v121_v7  ;;  %v124_v14 = vld [vmem:[%s745_s2 + $0x28] sm:$0xff] }
   0x4   :  { %486 = vmatpush3.bf16.msra.mxu0 %v485_v4  ;;  %v123_v13 = vld [vmem:[%s745_s2 + $0x20] sm:$0xff]  ;;  %v24_v15 = vld [vmem:[%s746_s0 + $0x8] sm:$0xff]  ;;  %v125_v17 = vld [vmem:[%s745_s2 + $0x30] sm:$0xff] }
   0x5   :  { %391 = vmatprep.subr.mxu0 %v540_v3  ;;  %489 = vmatpush3.bf16.msra.mxu1 %v488_v8  ;;  %v494_v16 = vpack.c.bf16 %v124_v14, %v123_v13  ;;  %v126_v18 = vld [vmem:[%s745_s2 + $0x38] sm:$0xff]  ;;  %v25_v19 = vld [vmem:[%s746_s0 + $0x10] sm:$0xff]  ;;  %v127_v21 = vld [vmem:[%s745_s2 + $0x40] sm:$0xff] }
   0x6   :  { %490 = vmatprep.subr.bf16.mxu1 %v538_v0  ;;  %v497_v20 = vpack.c.bf16 %v126_v18, %v125_v17  ;;  %v128_v22 = vld [vmem:[%s745_s2 + $0x48] sm:$0xff]  ;;  %v129_v24 = vld [vmem:[%s745_s2 + $0x50] sm:$0xff]  ;;  %v130_v25 = vld [vmem:[%s745_s2 + $0x58] sm:$0xff] }
   0x7   :  { %v500_v23 = vpack.c.bf16 %v128_v22, %v127_v21  ;;  %v503_v26 = vpack.c.bf16 %v130_v25, %v129_v24  ;;  %v131_v27 = vld [vmem:[%s745_s2 + $0x60] sm:$0xff]  ;;  %v132_v28 = vld [vmem:[%s745_s2 + $0x68] sm:$0xff]  ;;  %v133_v30 = vld [vmem:[%s745_s2 + $0x70] sm:$0xff] }
   0x8   :  { %392 = vmatpush3.msra.mxu0 %v28_v10  ;;  %v506_v29 = vpack.c.bf16 %v132_v28, %v131_v27  ;;  %v134_v31 = vld [vmem:[%s745_s2 + $0x78] sm:$0xff]  ;;  %v225_v33 = vld [vmem:[%s747_s4] sm:$0xff]  ;;  %v226_v34 = vld [vmem:[%s747_s4 + $0x8] sm:$0xff] }
   0x9   :  { %394 = vmatmul.mubr.msk.f32.vlgmr.msra.gmra.mrb[0].mxu0 %vm29_vm1, %v23_v11  ;;  %511 = vmatprep.subr.bf16.mxu0 %v538_v0  ;;  %v509_v32 = vpack.c.bf16 %v134_v31, %v133_v30  ;;  %v227_v35 = vld [vmem:[%s747_s4 + $0x10] sm:$0xff]  ;;  %v512_v36 = vpack.c.bf16 %v226_v34, %v225_v33  ;;  %v228_v37 = vld [vmem:[%s747_s4 + $0x18] sm:$0xff]  ;;  %v229_v39 = vld [vmem:[%s747_s4 + $0x20] sm:$0xff] }
   0xa   :  { %396 = vmatprep.mubr.msk.f32.mxu0 %vm539_vm0, %v540_v3  ;;  %492 = vmatpush3.bf16.msra.mxu1 %v491_v12  ;;  %v515_v38 = vpack.c.bf16 %v228_v37, %v227_v35  ;;  %v230_v40 = vld [vmem:[%s747_s4 + $0x28] sm:$0xff]  ;;  %v231_v42 = vld [vmem:[%s747_s4 + $0x30] sm:$0xff]  ;;  %v232_v43 = vld [vmem:[%s747_s4 + $0x38] sm:$0xff] }
   0xb   :  { %493 = vmatprep.subr.bf16.mxu1 %v538_v0  ;;  %513 = vmatpush3.bf16.msra.mxu0 %v512_v36  ;;  %v518_v41 = vpack.c.bf16 %v230_v40, %v229_v39  ;;  %v521_v44 = vpack.c.bf16 %v232_v43, %v231_v42  ;;  %v233_v45 = vld [vmem:[%s747_s4 + $0x40] sm:$0xff]  ;;  %v234_v46 = vld [vmem:[%s747_s4 + $0x48] sm:$0xff]  ;;  %v235_v48 = vld [vmem:[%s747_s4 + $0x50] sm:$0xff] }
   0xc   :  { %514 = vmatprep.subr.bf16.mxu0 %v538_v0  ;;  %v524_v47 = vpack.c.bf16 %v234_v46, %v233_v45  ;;  %v236_v49 = vld [vmem:[%s747_s4 + $0x58] sm:$0xff]  ;;  %v237_v51 = vld [vmem:[%s747_s4 + $0x60] sm:$0xff]  ;;  %v238_v52 = vld [vmem:[%s747_s4 + $0x68] sm:$0xff] }
   0xd   :  { %397 = vmatmul.mubr.msk.f32.gmra.mrb[2].mxu0 %vm29_vm1, %v24_v15  ;;  %v527_v50 = vpack.c.bf16 %v236_v49, %v235_v48  ;;  %v530_v53 = vpack.c.bf16 %v238_v52, %v237_v51  ;;  %v239_v60 = vld [vmem:[%s747_s4 + $0x70] sm:$0xff]  ;;  %v240_v61 = vld [vmem:[%s747_s4 + $0x78] sm:$0xff]  ;;  %v341_v63 = vld [vmem:[%s748_s3] ss:$0 sm:$0xff] }
   0xe   :  { %399 = vmatprep.mubr.msk.f32.mxu0 %vm539_vm0, %v540_v3  ;;  %495 = vmatpush3.bf16.msra.mxu1 %v494_v16  ;;  %v533_v62 = vpack.c.bf16 %v240_v61, %v239_v60  ;;  %v342_v13 = vld [vmem:[%s749_s5] ss:$0 sm:$0xff] }
   0xf   :  { %496 = vmatprep.subr.bf16.mxu1 %v538_v0  ;;  %516 = vmatpush3.bf16.msra.mxu0 %v515_v38 }
  0x10   :  { %517 = vmatprep.subr.bf16.mxu0 %v538_v0 }
  0x11   :  { %400 = vmatmul.mubr.msk.f32.gmra.mrb[4].mxu0 %vm29_vm1, %v25_v19 }
  0x12   :  { %498 = vmatpush3.bf16.msra.mxu1 %v497_v20  ;;  %475 = vmatprep.mubr.msk.f32.mxu0 %vm539_vm0, %v540_v3 }
  0x13   :  { %499 = vmatprep.subr.bf16.mxu1 %v538_v0  ;;  %519 = vmatpush3.bf16.msra.mxu0 %v518_v41 }
  0x14   :  { %520 = vmatprep.subr.bf16.mxu0 %v538_v0 }
  0x16   :  { %501 = vmatpush3.bf16.msra.mxu1 %v500_v23 }
  0x17   :  { %502 = vmatprep.subr.bf16.mxu1 %v538_v0  ;;  %522 = vmatpush3.bf16.msra.mxu0 %v521_v44 }
  0x18   :  { %523 = vmatprep.subr.bf16.mxu0 %v538_v0 }
  0x1a   :  { %504 = vmatpush3.bf16.msra.mxu1 %v503_v26 }
  0x1b   :  { %505 = vmatprep.subr.bf16.mxu1 %v538_v0  ;;  %525 = vmatpush3.bf16.msra.mxu0 %v524_v47 }
  0x1c   :  { %526 = vmatprep.subr.bf16.mxu0 %v538_v0 }
  0x1e   :  { %507 = vmatpush3.bf16.msra.mxu1 %v506_v29 }
  0x1f   :  { %508 = vmatprep.subr.bf16.mxu1 %v538_v0  ;;  %528 = vmatpush3.bf16.msra.mxu0 %v527_v50 }
  0x20   :  { %529 = vmatprep.subr.bf16.mxu0 %v538_v0 }
  0x22   :  { %510 = vmatpush3.bf16.msra.mxu1 %v509_v32 }
  0x23   :  { %531 = vmatpush3.bf16.msra.mxu0 %v530_v53 }
  0x24   :  { %532 = vmatprep.subr.bf16.mxu0 %v538_v0 }
  0x27   :  { %534 = vmatpush3.bf16.msra.mxu0 %v533_v62 }
  0xdc   :  { %v105_v54 = vpop.f32.mrb[0].mxu0 }
  0xdd   :  { %v395_v55 = vpop.f32.mrb[1].mxu0  ;;  %435 = vmatmul.mubr.f32.vlgmr.msra.gmra.mrb[0].mxu1 %v105_v54 }
  0xde   :  { %437 = vmatprep.mubr.msk.f32.mxu1 %vm539_vm0, %v540_v3 }
  0xe0   :  { %v110_v56 = vpop.f32.mrb[2].mxu0 }
  0xe1   :  { %v398_v57 = vpop.f32.mrb[3].mxu0  ;;  %438 = vmatmul.mubr.f32.gmra.mrb[2].mxu1 %v110_v56 }
  0xe2   :  { %440 = vmatprep.mubr.msk.f32.mxu1 %vm539_vm0, %v540_v3 }
  0xe4   :  { %v115_v58 = vpop.f32.mrb[4].mxu0 }
  0xe5   :  { %v401_v59 = vpop.f32.mrb[5].mxu0  ;;  %441 = vmatmul.mubr.f32.gmra.mrb[4].mxu1 %v115_v58 }
 0x1b0   :  { %v208_v0 = vpop.f32.mrb[0].mxu1 }
 0x1b1   :  { %v209_v1 = vadd.f32 %v341_v63, %v208_v0  ;;  %v436_v2 = vpop.f32.mrb[1].mxu1 }
 0x1b3   :  { %v222_v4 = vmax.f32 %v209_v1, 0.0 }
 0x1b4   :  { %v213_v5 = vpop.f32.mrb[2].mxu1 }
 0x1b5   :  { %v214_v6 = vadd.f32 %v341_v63, %v213_v5  ;;  %v439_v7 = vpop.f32.mrb[3].mxu1  ;;  %476 = vmatmul.mubr.f32.vlgmr.msra.gmra.mrb[6].mxu0 %v222_v4 }
 0x1b6   :  { %478 = vmatprep.mubr.msk.f32.mxu0 %vm539_vm0, %v540_v3 }
 0x1b7   :  { %v223_v8 = vmax.f32 %v214_v6, 0.0 }
 0x1b8   :  { %v218_v9 = vpop.f32.mrb[4].mxu1 }
 0x1b9   :  { %v219_v10 = vadd.f32 %v341_v63, %v218_v9  ;;  %v442_v11 = vpop.f32.mrb[5].mxu1  ;;  %479 = vmatmul.mubr.f32.gmra.mrb[8].mxu0 %v223_v8 }
 0x1ba   :  { %481 = vmatprep.mubr.msk.f32.mxu0 %vm539_vm0, %v540_v3 }
 0x1bb   :  { %v224_v12 = vmax.f32 %v219_v10, 0.0 }
 0x1bd   :  { %482 = vmatmul.mubr.f32.gmra.mrb[10].mxu0 %v224_v12 }
 0x288   :  { %v314_v14 = vpop.f32.mrb[6].mxu0 }
 0x289   :  { %v315_v15 = vadd.f32 %v342_v13, %v314_v14  ;;  %v477_v16 = vpop.f32.mrb[7].mxu0 }
 0x28b   :  { %v328_v17 = vmax.f32 %v315_v15, 0.0 }
 0x28c   :  { %v319_v18 = vpop.f32.mrb[8].mxu0 }
 0x28d   :  { %331 = vst [vmem:[%s750_s6] sm:$0xff] %v328_v17  ;;  %v320_v19 = vadd.f32 %v342_v13, %v319_v18  ;;  %v480_v20 = vpop.f32.mrb[9].mxu0 }
 0x28f   :  { %v329_v21 = vmax.f32 %v320_v19, 0.0 }
 0x290   :  { %v324_v22 = vpop.f32.mrb[10].mxu0 }
 0x291   :  { %332 = vst [vmem:[%s750_s6 + $0x8] sm:$0xff] %v329_v21  ;;  %v325_v3 = vadd.f32 %v342_v13, %v324_v22  ;;  %v483_v23 = vpop.f32.mrb[11].mxu0 }
 0x293   :  { %v330_v24 = vmax.f32 %v325_v3, 0.0 }
 0x295   :  { %333 = vst [vmem:[%s750_s6 + $0x10] sm:$0xff] %v330_v24 }

// kernel: discriminator_forward.3
= control target key start
LH: loop header
LB: loop body
LE: loop exit
PB: predicated region body
PF: predicated region fallthrough
CT: control target
= control target key end

     0   :  { %v1181_v0 = vmov 0.0|0.0   ;;  %vm1182_vm0 = vmmov 0   ;;  %v1183_v3 = vmov 0.0   ;;  %vm55_vm1 = vcmask 195584   ;;  %s1607_s1 = inlined_call_operand.vmem [shape: f32[24,128], index: 1, kind: input, shape index: {}]   ;;  %s1608_s2 = inlined_call_operand.vmem [shape: f32[128,128], index: 2, kind: input, shape index: {}]   ;;  %s1609_s0 = inlined_call_operand.vmem [shape: f32[24,24], index: 0, kind: input, shape index: {}]   ;;  %s1610_s4 = inlined_call_operand.vmem [shape: f32[128,128], index: 4, kind: input, shape index: {}]   ;;  %s1611_s3 = inlined_call_operand.vmem [shape: f32[1,128], index: 3, kind: input, shape index: {}]   ;;  %s1612_s7 = inlined_call_operand.vmem [shape: f32[128,128], index: 7, kind: input, shape index: {}]   ;;  %s1613_s5 = inlined_call_operand.vmem [shape: f32[1,128], index: 5, kind: input, shape index: {}]   ;;  %s1614_s6 = inlined_call_operand.vmem [shape: f32[8,24], index: 6, kind: input, shape index: {}]   ;;  %s1615_s9 = inlined_call_operand.vmem [shape: f32[128,128], index: 9, kind: input, shape index: {}]   ;;  %s1616_s11 = inlined_call_operand.vmem [shape: f32[128,128], index: 11, kind: input, shape index: {}]   ;;  %s1617_s8 = inlined_call_operand.vmem [shape: f32[1,128], index: 8, kind: input, shape index: {}]   ;;  %s1618_s10 = inlined_call_operand.vmem [shape: f32[1,128], index: 10, kind: input, shape index: {}]   ;;  %s1619_s12 = inlined_call_operand.vmem [shape: f32[1,128], index: 12, kind: input, shape index: {}]   ;;  %s1620_s13 = inlined_call_operand.vmem [shape: f32[8,128], index: 13, kind: output, shape index: {}]  }
   0x1   :  { %1048 = vmatprep.subr.bf16.mxu1 %v1181_v0  ;;  %v52_v1 = vld [vmem:[%s1607_s1] sm:$0xff]  ;;  %v53_v2 = vld [vmem:[%s1607_s1 + $0x8] sm:$0xff]  ;;  %843 = vmatprep.mubr.msk.f32.mxu1 %vm1182_vm0, %v1183_v3  ;;  %v54_v7 = vld [vmem:[%s1607_s1 + $0x10] sm:$0xff] }
   0x2   :  { %v1049_v4 = vpack.c.bf16 %v53_v2, %v52_v1  ;;  %1075 = vmatprep.subr.bf16.mxu0 %v1181_v0  ;;  %925 = vmatprep.mubr.msk.f32.mxu0 %vm1182_vm0, %v1183_v3  ;;  %v145_v5 = vld [vmem:[%s1608_s2] sm:$0xff]  ;;  %v146_v6 = vld [vmem:[%s1608_s2 + $0x8] sm:$0xff]  ;;  %v147_v10 = vld [vmem:[%s1608_s2 + $0x10] sm:$0xff] }
   0x3   :  { %v49_v8 = vld [vmem:[%s1609_s0] sm:$0xff]  ;;  %v1052_v9 = vpack.c.bf16 %v146_v6, %v145_v5  ;;  %v148_v11 = vld [vmem:[%s1608_s2 + $0x18] sm:$0xff]  ;;  %v50_v12 = vld [vmem:[%s1609_s0 + $0x8] sm:$0xff] }
   0x4   :  { %1050 = vmatpush3.bf16.msra.mxu1 %v1049_v4  ;;  %v1055_v13 = vpack.c.bf16 %v148_v11, %v147_v10  ;;  %v149_v14 = vld [vmem:[%s1608_s2 + $0x20] sm:$0xff]  ;;  %v150_v15 = vld [vmem:[%s1608_s2 + $0x28] sm:$0xff]  ;;  %v51_v16 = vld [vmem:[%s1609_s0 + $0x10] sm:$0xff] }
   0x5   :  { %841 = vmatprep.subr.mxu1 %v1183_v3  ;;  %v1058_v17 = vpack.c.bf16 %v150_v15, %v149_v14  ;;  %v151_v18 = vld [vmem:[%s1608_s2 + $0x30] sm:$0xff]  ;;  %v152_v19 = vld [vmem:[%s1608_s2 + $0x38] sm:$0xff]  ;;  %v153_v21 = vld [vmem:[%s1608_s2 + $0x40] sm:$0xff] }
   0x6   :  { %v1061_v20 = vpack.c.bf16 %v152_v19, %v151_v18  ;;  %v154_v22 = vld [vmem:[%s1608_s2 + $0x48] sm:$0xff]  ;;  %v155_v24 = vld [vmem:[%s1608_s2 + $0x50] sm:$0xff]  ;;  %v156_v25 = vld [vmem:[%s1608_s2 + $0x58] sm:$0xff] }
   0x7   :  { %v1064_v23 = vpack.c.bf16 %v154_v22, %v153_v21  ;;  %v1067_v26 = vpack.c.bf16 %v156_v25, %v155_v24  ;;  %v157_v27 = vld [vmem:[%s1608_s2 + $0x60] sm:$0xff]  ;;  %v158_v28 = vld [vmem:[%s1608_s2 + $0x68] sm:$0xff]  ;;  %v159_v30 = vld [vmem:[%s1608_s2 + $0x70] sm:$0xff] }
   0x8   :  { %842 = vmatpush3.msra.mxu1 %v54_v7  ;;  %v1070_v29 = vpack.c.bf16 %v158_v28, %v157_v27  ;;  %v160_v31 = vld [vmem:[%s1608_s2 + $0x78] sm:$0xff]  ;;  %v251_v33 = vld [vmem:[%s1610_s4] sm:$0xff]  ;;  %v252_v34 = vld [vmem:[%s1610_s4 + $0x8] sm:$0xff] }
   0x9   :  { %844 = vmatmul.mubr.msk.f32.vlgmr.msra.gmra.mrb[0].mxu1 %vm55_vm1, %v49_v8  ;;  %1051 = vmatprep.subr.bf16.mxu1 %v1181_v0  ;;  %v1073_v32 = vpack.c.bf16 %v160_v31, %v159_v30  ;;  %v253_v35 = vld [vmem:[%s1610_s4 + $0x10] sm:$0xff]  ;;  %v1076_v36 = vpack.c.bf16 %v252_v34, %v251_v33  ;;  %v254_v37 = vld [vmem:[%s1610_s4 + $0x18] sm:$0xff]  ;;  %v255_v39 = vld [vmem:[%s1610_s4 + $0x20] sm:$0xff] }
   0xa   :  { %846 = vmatprep.mubr.msk.f32.mxu1 %vm1182_vm0, %v1183_v3  ;;  %1053 = vmatpush3.bf16.msra.mxu1 %v1052_v9  ;;  %v1079_v38 = vpack.c.bf16 %v254_v37, %v253_v35  ;;  %v256_v40 = vld [vmem:[%s1610_s4 + $0x28] sm:$0xff]  ;;  %v257_v42 = vld [vmem:[%s1610_s4 + $0x30] sm:$0xff]  ;;  %v258_v43 = vld [vmem:[%s1610_s4 + $0x38] sm:$0xff] }
   0xb   :  { %1054 = vmatprep.subr.bf16.mxu1 %v1181_v0  ;;  %1077 = vmatpush3.bf16.msra.mxu0 %v1076_v36  ;;  %v1082_v41 = vpack.c.bf16 %v256_v40, %v255_v39  ;;  %v1085_v44 = vpack.c.bf16 %v258_v43, %v257_v42  ;;  %v259_v45 = vld [vmem:[%s1610_s4 + $0x40] sm:$0xff]  ;;  %v260_v46 = vld [vmem:[%s1610_s4 + $0x48] sm:$0xff]  ;;  %v261_v48 = vld [vmem:[%s1610_s4 + $0x50] sm:$0xff] }
   0xc   :  { %1078 = vmatprep.subr.bf16.mxu0 %v1181_v0  ;;  %v1088_v47 = vpack.c.bf16 %v260_v46, %v259_v45  ;;  %v262_v49 = vld [vmem:[%s1610_s4 + $0x58] sm:$0xff]  ;;  %v263_v51 = vld [vmem:[%s1610_s4 + $0x60] sm:$0xff]  ;;  %v264_v52 = vld [vmem:[%s1610_s4 + $0x68] sm:$0xff] }
   0xd   :  { %847 = vmatmul.mubr.msk.f32.gmra.mrb[2].mxu1 %vm55_vm1, %v50_v12  ;;  %v1091_v50 = vpack.c.bf16 %v262_v49, %v261_v48  ;;  %v1094_v53 = vpack.c.bf16 %v264_v52, %v263_v51  ;;  %v265_v60 = vld [vmem:[%s1610_s4 + $0x70] sm:$0xff]  ;;  %v266_v61 = vld [vmem:[%s1610_s4 + $0x78] sm:$0xff]  ;;  %v732_v63 = vld [vmem:[%s1611_s3] ss:$0 sm:$0xff] }
   0xe   :  { %849 = vmatprep.mubr.msk.f32.mxu1 %vm1182_vm0, %v1183_v3  ;;  %1056 = vmatpush3.bf16.msra.mxu1 %v1055_v13  ;;  %v1097_v62 = vpack.c.bf16 %v266_v61, %v265_v60  ;;  %v438_v14 = vld [vmem:[%s1612_s7] sm:$0xff]  ;;  %v439_v15 = vld [vmem:[%s1612_s7 + $0x8] sm:$0xff]  ;;  %v441_v18 = vld [vmem:[%s1612_s7 + $0x18] sm:$0xff] }
   0xf   :  { %1057 = vmatprep.subr.bf16.mxu1 %v1181_v0  ;;  %1080 = vmatpush3.bf16.msra.mxu0 %v1079_v38  ;;  %v443_v21 = vld [vmem:[%s1612_s7 + $0x28] sm:$0xff]  ;;  %v445_v24 = vld [vmem:[%s1612_s7 + $0x38] sm:$0xff]  ;;  %v452_v35 = vld [vmem:[%s1612_s7 + $0x70] sm:$0xff] }
  0x10   :  { %1081 = vmatprep.subr.bf16.mxu0 %v1181_v0  ;;  %v447_v27 = vld [vmem:[%s1612_s7 + $0x48] sm:$0xff]  ;;  %v449_v30 = vld [vmem:[%s1612_s7 + $0x58] sm:$0xff]  ;;  %v733_v38 = vld [vmem:[%s1613_s5] ss:$0 sm:$0xff] }
  0x11   :  { %850 = vmatmul.mubr.msk.f32.gmra.mrb[4].mxu1 %vm55_vm1, %v51_v16  ;;  %v440_v16 = vld [vmem:[%s1612_s7 + $0x10] sm:$0xff]  ;;  %v451_v33 = vld [vmem:[%s1612_s7 + $0x68] sm:$0xff]  ;;  %v453_v36 = vld [vmem:[%s1612_s7 + $0x78] sm:$0xff] }
  0x12   :  { %1059 = vmatpush3.bf16.msra.mxu1 %v1058_v17  ;;  %884 = vmatprep.mubr.msk.f32.mxu1 %vm1182_vm0, %v1183_v3  ;;  %v1103_v17 = vpack.c.bf16 %v439_v15, %v438_v14  ;;  %v1106_v19 = vpack.c.bf16 %v441_v18, %v440_v16  ;;  %v1124_v37 = vpack.c.bf16 %v453_v36, %v452_v35  ;;  %v358_v52 = vld [vmem:[%s1614_s6] sm:$0xff]  ;;  %v537_v60 = vld [vmem:[%s1615_s9 + $0x28] sm:$0xff]  ;;  %v546_v14 = vld [vmem:[%s1615_s9 + $0x70] sm:$0xff] }
  0x13   :  { %1060 = vmatprep.subr.bf16.mxu1 %v1181_v0  ;;  %1083 = vmatpush3.bf16.msra.mxu0 %v1082_v41  ;;  %v547_v15 = vld [vmem:[%s1615_s9 + $0x78] sm:$0xff]  ;;  %v626_v18 = vld [vmem:[%s1616_s11 + $0x8] sm:$0xff] }
  0x14   :  { %1084 = vmatprep.subr.bf16.mxu0 %v1181_v0  ;;  %v1148_v16 = vpack.c.bf16 %v547_v15, %v546_v14  ;;  %v638_v35 = vld [vmem:[%s1616_s11 + $0x68] sm:$0xff] }
  0x16   :  { %1062 = vmatpush3.bf16.msra.mxu1 %v1061_v20  ;;  %v442_v20 = vld [vmem:[%s1612_s7 + $0x20] sm:$0xff] }
  0x17   :  { %1063 = vmatprep.subr.bf16.mxu1 %v1181_v0  ;;  %1086 = vmatpush3.bf16.msra.mxu0 %v1085_v44  ;;  %v1109_v22 = vpack.c.bf16 %v443_v21, %v442_v20  ;;  %v628_v20 = vld [vmem:[%s1616_s11 + $0x18] sm:$0xff] }
  0x18   :  { %1087 = vmatprep.subr.bf16.mxu0 %v1181_v0 }
  0x1a   :  { %1065 = vmatpush3.bf16.msra.mxu1 %v1064_v23  ;;  %v444_v23 = vld [vmem:[%s1612_s7 + $0x30] sm:$0xff] }
  0x1b   :  { %1066 = vmatprep.subr.bf16.mxu1 %v1181_v0  ;;  %1089 = vmatpush3.bf16.msra.mxu0 %v1088_v47  ;;  %v1112_v25 = vpack.c.bf16 %v445_v24, %v444_v23  ;;  %v630_v23 = vld [vmem:[%s1616_s11 + $0x28] sm:$0xff] }
  0x1c   :  { %1090 = vmatprep.subr.bf16.mxu0 %v1181_v0 }
  0x1e   :  { %1068 = vmatpush3.bf16.msra.mxu1 %v1067_v26  ;;  %v446_v26 = vld [vmem:[%s1612_s7 + $0x40] sm:$0xff] }
  0x1f   :  { %1069 = vmatprep.subr.bf16.mxu1 %v1181_v0  ;;  %1092 = vmatpush3.bf16.msra.mxu0 %v1091_v50  ;;  %v1115_v28 = vpack.c.bf16 %v447_v27, %v446_v26  ;;  %v632_v26 = vld [vmem:[%s1616_s11 + $0x38] sm:$0xff] }
  0x20   :  { %1093 = vmatprep.subr.bf16.mxu0 %v1181_v0 }
  0x22   :  { %1071 = vmatpush3.bf16.msra.mxu1 %v1070_v29  ;;  %v448_v29 = vld [vmem:[%s1612_s7 + $0x50] sm:$0xff] }
  0x23   :  { %1072 = vmatprep.subr.bf16.mxu1 %v1181_v0  ;;  %1095 = vmatpush3.bf16.msra.mxu0 %v1094_v53  ;;  %v1118_v31 = vpack.c.bf16 %v449_v30, %v448_v29  ;;  %v532_v53 = vld [vmem:[%s1615_s9] sm:$0xff]  ;;  %v634_v29 = vld [vmem:[%s1616_s11 + $0x48] sm:$0xff] }
  0x24   :  { %1096 = vmatprep.subr.bf16.mxu0 %v1181_v0 }
  0x26   :  { %1074 = vmatpush3.bf16.msra.mxu1 %v1073_v32  ;;  %v450_v32 = vld [vmem:[%s1612_s7 + $0x60] sm:$0xff] }
  0x27   :  { %1099 = vmatprep.subr.bf16.mxu1 %v1181_v0  ;;  %1098 = vmatpush3.bf16.msra.mxu0 %v1097_v62  ;;  %v1121_v34 = vpack.c.bf16 %v451_v33, %v450_v32  ;;  %v538_v62 = vld [vmem:[%s1615_s9 + $0x30] sm:$0xff]  ;;  %v636_v32 = vld [vmem:[%s1616_s11 + $0x58] sm:$0xff] }
  0x28   :  { %1102 = vmatprep.subr.bf16.mxu0 %v1181_v0 }
  0xdc   :  { %v131_v54 = vpop.f32.mrb[0].mxu1 }
  0xdd   :  { %v845_v55 = vpop.f32.mrb[1].mxu1  ;;  %885 = vmatmul.mubr.f32.vlgmr.msra.gmra.mrb[6].mxu1 %v131_v54  ;;  %v533_v54 = vld [vmem:[%s1615_s9 + $0x8] sm:$0xff] }
  0xde   :  { %887 = vmatprep.mubr.msk.f32.mxu1 %vm1182_vm0, %v1183_v3  ;;  %v534_v55 = vld [vmem:[%s1615_s9 + $0x10] sm:$0xff] }
  0xe0   :  { %v136_v56 = vpop.f32.mrb[2].mxu1 }
  0xe1   :  { %v848_v57 = vpop.f32.mrb[3].mxu1  ;;  %888 = vmatmul.mubr.f32.gmra.mrb[8].mxu1 %v136_v56  ;;  %v1127_v56 = vpack.c.bf16 %v533_v54, %v532_v53 }
  0xe2   :  { %890 = vmatprep.mubr.msk.f32.mxu1 %vm1182_vm0, %v1183_v3  ;;  %v535_v57 = vld [vmem:[%s1615_s9 + $0x18] sm:$0xff] }
  0xe4   :  { %v141_v58 = vpop.f32.mrb[4].mxu1 }
  0xe5   :  { %v851_v59 = vpop.f32.mrb[5].mxu1  ;;  %891 = vmatmul.mubr.f32.gmra.mrb[10].mxu1 %v141_v58  ;;  %v1130_v58 = vpack.c.bf16 %v535_v57, %v534_v55 }
  0xe6   :  { %940 = vmatprep.mubr.msk.f32.mxu1 %vm1182_vm0, %v1183_v3  ;;  %v536_v59 = vld [vmem:[%s1615_s9 + $0x20] sm:$0xff] }
  0xe7   :  { %v1133_v61 = vpack.c.bf16 %v537_v60, %v536_v59 }
 0x1b0   :  { %v234_v1 = vpop.f32.mrb[6].mxu1 }
 0x1b1   :  { %v235_v2 = vadd.f32 %v732_v63, %v234_v1  ;;  %v886_v4 = vpop.f32.mrb[7].mxu1 }
 0x1b2   :  { %v541_v4 = vld [vmem:[%s1615_s9 + $0x48] sm:$0xff] }
 0x1b3   :  { %v248_v5 = vmax.f32 %v235_v2, 0.0  ;;  %v540_v2 = vld [vmem:[%s1615_s9 + $0x40] sm:$0xff] }
 0x1b4   :  { %v239_v6 = vpop.f32.mrb[8].mxu1 }
 0x1b5   :  { %v240_v7 = vadd.f32 %v732_v63, %v239_v6  ;;  %v889_v8 = vpop.f32.mrb[9].mxu1  ;;  %926 = vmatmul.mubr.f32.vlgmr.msra.gmra.mrb[0].mxu0 %v248_v5  ;;  %v1139_v5 = vpack.c.bf16 %v541_v4, %v540_v2  ;;  %v542_v6 = vld [vmem:[%s1615_s9 + $0x50] sm:$0xff] }
 0x1b6   :  { %928 = vmatprep.mubr.msk.f32.mxu0 %vm1182_vm0, %v1183_v3  ;;  %1104 = vmatpush3.bf16.msra.mxu0 %v1103_v17  ;;  %v625_v17 = vld [vmem:[%s1616_s11] sm:$0xff] }
 0x1b7   :  { %v249_v9 = vmax.f32 %v240_v7, 0.0  ;;  %1105 = vmatprep.subr.bf16.mxu0 %v1181_v0  ;;  %v543_v7 = vld [vmem:[%s1615_s9 + $0x58] sm:$0xff] }
 0x1b8   :  { %v244_v10 = vpop.f32.mrb[10].mxu1  ;;  %v1142_v8 = vpack.c.bf16 %v543_v7, %v542_v6 }
 0x1b9   :  { %929 = vmatmul.mubr.f32.gmra.mrb[2].mxu0 %v249_v9  ;;  %v245_v11 = vadd.f32 %v732_v63, %v244_v10  ;;  %v892_v12 = vpop.f32.mrb[11].mxu1  ;;  %v539_v63 = vld [vmem:[%s1615_s9 + $0x38] sm:$0xff]  ;;  %v544_v9 = vld [vmem:[%s1615_s9 + $0x60] sm:$0xff]  ;;  %v545_v10 = vld [vmem:[%s1615_s9 + $0x68] sm:$0xff] }
 0x1ba   :  { %931 = vmatprep.mubr.msk.f32.mxu0 %vm1182_vm0, %v1183_v3  ;;  %1107 = vmatpush3.bf16.msra.mxu0 %v1106_v19  ;;  %v1136_v1 = vpack.c.bf16 %v539_v63, %v538_v62  ;;  %v1151_v19 = vpack.c.bf16 %v626_v18, %v625_v17 }
 0x1bb   :  { %v250_v13 = vmax.f32 %v245_v11, 0.0  ;;  %1108 = vmatprep.subr.bf16.mxu0 %v1181_v0  ;;  %v1145_v11 = vpack.c.bf16 %v545_v10, %v544_v9 }
 0x1bd   :  { %932 = vmatmul.mubr.f32.gmra.mrb[4].mxu0 %v250_v13 }
 0x1be   :  { %975 = vmatprep.mubr.msk.f32.mxu0 %vm1182_vm0, %v1183_v3  ;;  %1110 = vmatpush3.bf16.msra.mxu0 %v1109_v22  ;;  %v629_v22 = vld [vmem:[%s1616_s11 + $0x20] sm:$0xff] }
 0x1bf   :  { %1111 = vmatprep.subr.bf16.mxu0 %v1181_v0  ;;  %v1157_v24 = vpack.c.bf16 %v630_v23, %v629_v22 }
 0x1c2   :  { %1113 = vmatpush3.bf16.msra.mxu0 %v1112_v25  ;;  %v631_v25 = vld [vmem:[%s1616_s11 + $0x30] sm:$0xff] }
 0x1c3   :  { %1114 = vmatprep.subr.bf16.mxu0 %v1181_v0  ;;  %v1160_v27 = vpack.c.bf16 %v632_v26, %v631_v25 }
 0x1c6   :  { %1116 = vmatpush3.bf16.msra.mxu0 %v1115_v28  ;;  %v633_v28 = vld [vmem:[%s1616_s11 + $0x40] sm:$0xff] }
 0x1c7   :  { %1117 = vmatprep.subr.bf16.mxu0 %v1181_v0  ;;  %v1163_v30 = vpack.c.bf16 %v634_v29, %v633_v28 }
 0x1ca   :  { %1119 = vmatpush3.bf16.msra.mxu0 %v1118_v31  ;;  %v635_v31 = vld [vmem:[%s1616_s11 + $0x50] sm:$0xff] }
 0x1cb   :  { %1120 = vmatprep.subr.bf16.mxu0 %v1181_v0  ;;  %v1166_v33 = vpack.c.bf16 %v636_v32, %v635_v31 }
 0x1ce   :  { %1122 = vmatpush3.bf16.msra.mxu0 %v1121_v34  ;;  %v637_v34 = vld [vmem:[%s1616_s11 + $0x60] sm:$0xff] }
 0x1cf   :  { %1123 = vmatprep.subr.bf16.mxu0 %v1181_v0  ;;  %v1169_v36 = vpack.c.bf16 %v638_v35, %v637_v34 }
 0x1d2   :  { %1125 = vmatpush3.bf16.msra.mxu0 %v1124_v37  ;;  %v735_v37 = vld [vmem:[%s1617_s8] ss:$0 sm:$0xff] }
 0x1d3   :  { %1150 = vmatprep.subr.bf16.mxu0 %v1181_v0 }
 0x288   :  { %v340_v39 = vpop.f32.mrb[0].mxu0 }
 0x289   :  { %v927_v40 = vpop.f32.mrb[1].mxu0  ;;  %v341_v41 = vadd.f32 %v733_v38, %v340_v39 }
 0x28b   :  { %v354_v45 = vmax.f32 %v341_v41, 0.0 }
 0x28c   :  { %v345_v42 = vpop.f32.mrb[2].mxu0 }
 0x28d   :  { %v346_v43 = vadd.f32 %v733_v38, %v345_v42  ;;  %v930_v44 = vpop.f32.mrb[3].mxu0  ;;  %v639_v42 = vld [vmem:[%s1616_s11 + $0x70] sm:$0xff] }
 0x28f   :  { %v355_v46 = vmax.f32 %v346_v43, 0.0  ;;  %v640_v43 = vld [vmem:[%s1616_s11 + $0x78] sm:$0xff] }
 0x290   :  { %v350_v47 = vpop.f32.mrb[4].mxu0  ;;  %v1172_v44 = vpack.c.bf16 %v640_v43, %v639_v42 }
 0x291   :  { %v1100_v48 = vpack.c.bf16 %v355_v46, %v354_v45  ;;  %v351_v49 = vadd.f32 %v733_v38, %v350_v47  ;;  %v933_v50 = vpop.f32.mrb[5].mxu0 }
 0x293   :  { %v356_v51 = vmax.f32 %v351_v49, 0.0  ;;  %1101 = vmatpush3.bf16.msra.mxu1 %v1100_v48  ;;  %v737_v48 = vld [vmem:[%s1619_s12] ss:$0 sm:$0xff] }
 0x294   :  { %938 = vmatprep.subr.mxu1 %v1183_v3 }
 0x297   :  { %939 = vmatpush3.msra.mxu1 %v356_v51 }
 0x298   :  { %941 = vmatmul.mubr.msk.f32.vlgmr.msra.gmra.mrb[12].mxu1 %vm55_vm1, %v358_v52  ;;  %1126 = vmatprep.subr.bf16.mxu1 %v1181_v0 }
 0x299   :  { %1010 = vmatprep.mubr.msk.f32.mxu1 %vm1182_vm0, %v1183_v3  ;;  %1128 = vmatpush3.bf16.msra.mxu1 %v1127_v56 }
 0x29a   :  { %1129 = vmatprep.subr.bf16.mxu1 %v1181_v0 }
 0x29d   :  { %1131 = vmatpush3.bf16.msra.mxu1 %v1130_v58 }
 0x29e   :  { %1132 = vmatprep.subr.bf16.mxu1 %v1181_v0 }
 0x2a1   :  { %1134 = vmatpush3.bf16.msra.mxu1 %v1133_v61 }
 0x2a2   :  { %1135 = vmatprep.subr.bf16.mxu1 %v1181_v0 }
 0x2a5   :  { %1137 = vmatpush3.bf16.msra.mxu1 %v1136_v1 }
 0x2a6   :  { %1138 = vmatprep.subr.bf16.mxu1 %v1181_v0 }
 0x2a9   :  { %1140 = vmatpush3.bf16.msra.mxu1 %v1139_v5 }
 0x2aa   :  { %1141 = vmatprep.subr.bf16.mxu1 %v1181_v0 }
 0x2ad   :  { %1143 = vmatpush3.bf16.msra.mxu1 %v1142_v8 }
 0x2ae   :  { %1144 = vmatprep.subr.bf16.mxu1 %v1181_v0 }
 0x2b1   :  { %1146 = vmatpush3.bf16.msra.mxu1 %v1145_v11 }
 0x2b2   :  { %1147 = vmatprep.subr.bf16.mxu1 %v1181_v0 }
 0x2b5   :  { %1149 = vmatpush3.bf16.msra.mxu1 %v1148_v16 }
 0x36b   :  { %v428_v12 = vpop.f32.mrb[12].mxu1 }
 0x36c   :  { %v942_v13 = vpop.f32.mrb[13].mxu1  ;;  %976 = vmatmul.mubr.f32.vlgmr.msra.gmra.mrb[6].mxu0 %v428_v12 }
 0x36d   :  { %1045 = vmatprep.mubr.msk.f32.mxu0 %vm1182_vm0, %v1183_v3  ;;  %v627_v3 = vld [vmem:[%s1616_s11 + $0x10] sm:$0xff]  ;;  %1152 = vmatpush3.bf16.msra.mxu0 %v1151_v19 }
 0x36e   :  { %v1154_v21 = vpack.c.bf16 %v628_v20, %v627_v3  ;;  %1153 = vmatprep.subr.bf16.mxu0 %v1181_v0 }
 0x371   :  { %1155 = vmatpush3.bf16.msra.mxu0 %v1154_v21 }
 0x372   :  { %1156 = vmatprep.subr.bf16.mxu0 %v1181_v0 }
 0x375   :  { %1158 = vmatpush3.bf16.msra.mxu0 %v1157_v24 }
 0x376   :  { %1159 = vmatprep.subr.bf16.mxu0 %v1181_v0 }
 0x379   :  { %1161 = vmatpush3.bf16.msra.mxu0 %v1160_v27 }
 0x37a   :  { %1162 = vmatprep.subr.bf16.mxu0 %v1181_v0 }
 0x37d   :  { %1164 = vmatpush3.bf16.msra.mxu0 %v1163_v30 }
 0x37e   :  { %1165 = vmatprep.subr.bf16.mxu0 %v1181_v0 }
 0x381   :  { %1167 = vmatpush3.bf16.msra.mxu0 %v1166_v33 }
 0x382   :  { %1168 = vmatprep.subr.bf16.mxu0 %v1181_v0 }
 0x385   :  { %1170 = vmatpush3.bf16.msra.mxu0 %v1169_v36 }
 0x386   :  { %1171 = vmatprep.subr.bf16.mxu0 %v1181_v0  ;;  %v736_v0 = vld [vmem:[%s1618_s10] ss:$0 sm:$0xff] }
 0x389   :  { %1173 = vmatpush3.bf16.msra.mxu0 %v1172_v44 }
 0x43f   :  { %v527_v38 = vpop.f32.mrb[6].mxu0 }
 0x440   :  { %v528_v39 = vadd.f32 %v735_v37, %v527_v38  ;;  %v977_v40 = vpop.f32.mrb[7].mxu0 }
 0x442   :  { %v531_v41 = vmax.f32 %v528_v39, 0.0 }
 0x444   :  { %1011 = vmatmul.mubr.f32.vlgmr.msra.gmra.mrb[14].mxu1 %v531_v41 }
 0x517   :  { %v621_v45 = vpop.f32.mrb[14].mxu1 }
 0x518   :  { %v622_v46 = vadd.f32 %v736_v0, %v621_v45  ;;  %v1012_v47 = vpop.f32.mrb[15].mxu1 }
 0x51a   :  { %1046 = vmatmul.mubr.f32.vlgmr.msra.gmra.mrb[8].mxu0 %v622_v46 }
 0x5ed   :  { %v714_v49 = vpop.f32.mrb[8].mxu0 }
 0x5ee   :  { %v715_v50 = vadd.f32 %v737_v48, %v714_v49  ;;  %v1047_v51 = vpop.f32.mrb[9].mxu0 }
 0x5f0   :  { %v718_v52 = vsub.f32 0.0, %v715_v50 }
 0x5f2   :  { %v719_v53 = vmul.f32 1.442695, %v718_v52 }
 0x5f4   :  { %1177 = vpow2.f32 %v719_v53 }
 0x5fe   :  { %v1178_v54 = vpop.eup %1177 }
 0x5ff   :  { %v721_v55 = vadd.f32 1.0, %v1178_v54 }
 0x601   :  { %1179 = vrcp.f32 %v721_v55 }
 0x60b   :  { %v1180_v56 = vpop.eup %1179 }
 0x60c   :  { %724 = vst [vmem:[%s1620_s13] sm:$0xff] %v1180_v56 }

</bundles_post_ra>
